<compile_context>
chip_gen: v5e
topology: v5e:2x2
jax: 0.10.0
libtpu: 0.0.40
codegen_flags: <defaults>
</compile_context>

<pallas_src>
import functools

import jax
import jax.numpy as jnp
from jax import lax
from jax.experimental import pallas as pl
from jax.experimental.pallas import tpu as pltpu


def _round_up(v, m):
    return ((v + m - 1) // m) * m


def _pick_tile(n, candidates):
    """Largest candidate tile that divides n (fallback: n itself)."""
    for t in candidates:
        if t <= n and n % t == 0:
            return t
    return n


def _default_exp_dtype():
    # bf16 EUP exists on v6e / v7x; keep exp in f32 on v5e and older.
    try:
        kind = jax.devices()[0].device_kind.lower()
    except Exception:
        return jnp.float32
    return jnp.bfloat16 if ("v6" in kind or "v7" in kind) else jnp.float32


def _vmem_limit_bytes():
    # Generation-aware limit: physical VMEM minus ~15% headroom for Mosaic
    # internal scratch (~109 MiB on v5e/v6e, ~54 MiB on v7x).
    cap = 128 * 1024 * 1024
    try:
        cap = int(pltpu.get_tpu_info().vmem_capacity_bytes)
    except Exception:
        pass
    return max(32 * 1024 * 1024, int(cap * 0.85))


# ---------------------------------------------------------------------------
# Kernel 1: fused QKV projection for one (TQ, Cp) tile of x.
# ---------------------------------------------------------------------------
def _qkv_proj_kernel(x_ref, w_ref, b_ref, q_ref, kv_ref, *, cqp):
    qkv = jnp.dot(x_ref[...], w_ref[...],
                  preferred_element_type=jnp.float32) + b_ref[...]
    qkv = qkv.astype(q_ref.dtype)
    q_ref[...] = qkv[:, :cqp]        # (TQ, Cqp)
    kv_ref[...] = qkv[:, cqp:]       # (TQ, Cqp + Cp) = [k | v]


# ---------------------------------------------------------------------------
# Kernel 2: online-softmax attention + residual for one query tile.
# ---------------------------------------------------------------------------
def _attn_kernel(q_ref, kv_ref, x_ref, gamma_ref, o_ref, *,
                 tq, tkv, n_kv, cqp, cp, exp_dtype, approx_recip):
    q = q_ref[...]                                      # (TQ, Cqp) bf16

    def kv_step(j, carry):
        m, l, acc = carry
        row0 = pl.multiple_of(j * tkv, tkv)
        k = kv_ref[pl.ds(row0, tkv), pl.ds(0, cqp)]     # (TKV, Cqp) bf16
        v = kv_ref[pl.ds(row0, tkv), pl.ds(cqp, cp)]    # (TKV, Cp)  bf16
        # Contract the LAST dims of q and k -> no in-kernel transpose.
        s = lax.dot_general(q, k, dimension_numbers=(((1,), (1,)), ((), ())),
                            preferred_element_type=jnp.float32)  # (TQ, TKV)
        m_new = jnp.maximum(m, jnp.max(s, axis=-1, keepdims=True))
        alpha = jnp.exp(m - m_new)
        p = jnp.exp((s - m_new).astype(exp_dtype))
        l_new = alpha * l + jnp.sum(p.astype(jnp.float32), axis=-1,
                                    keepdims=True)
        acc_new = alpha * acc + jnp.dot(p.astype(jnp.bfloat16), v,
                                        preferred_element_type=jnp.float32)
        return m_new, l_new, acc_new

    init = (jnp.full((tq, 1), -jnp.inf, jnp.float32),
            jnp.zeros((tq, 1), jnp.float32),
            jnp.zeros((tq, cp), jnp.float32))
    if n_kv == 1:
        _, l, acc = kv_step(0, init)
    else:
        _, l, acc = lax.fori_loop(0, n_kv, kv_step, init,
                                  unroll=True if n_kv <= 8 else False)

    # Normalize AFTER the PV matmul: (TQ, Cp) multiply instead of (TQ, N).
    if approx_recip:
        out = acc * pl.reciprocal(l, approx=True)
    else:
        out = acc / l
    x_q = x_ref[...].astype(jnp.float32)
    o_ref[...] = (gamma_ref[0] * out + x_q).astype(o_ref.dtype)


# ---------------------------------------------------------------------------
# Wrapper
# ---------------------------------------------------------------------------
def self_attention_pallas(x_nchw, wq, bq, wk, bk, wv, bv, gamma, *,
                          tq_target=256, tkv_target=512, approx_recip=True):
    B, C, H, W = x_nchw.shape
    N = H * W
    Cq = wq.shape[0]

    Cp = _round_up(C, 128)            # lane-dense channel width
    Cqp = _round_up(Cq, 128)          # 128-aligned q/k segment width
    D = 2 * Cqp + Cp                  # fused projection width [q | k | v]
    Ckv = Cqp + Cp

    TQ = _pick_tile(N, (tq_target, 256, 128, 64, 32, 16, 8))
    # TODO(synk): for awkward N, pad/mask the edge query tile so TQ can stay
    # at 256 instead of falling back to a small divisor of N.
    TKV = _pick_tile(N, (tkv_target, 512, 256, 128, 64, 32, 16, 8))
    n_q = N // TQ
    n_kv = N // TKV

    # NCHW -> (B, N, Cp) bf16 (MXU operands; f32 accumulation in-kernel).
    # TODO(synk): for small C on v5e a channel-major (B, C_sublane, N) layout
    # would avoid the Cp=128 padding tax and both XLA transposes.
    x_bnc = jnp.transpose(x_nchw.reshape(B, C, N), (0, 2, 1))
    x_pad = jnp.pad(x_bnc, ((0, 0), (0, 0), (0, Cp - C))).astype(jnp.bfloat16)

    # Fused, pre-transposed, zero-padded projection weight / bias.
    w_fused = jnp.zeros((Cp, D), jnp.float32)
    w_fused = w_fused.at[:C, 0:Cq].set(wq.astype(jnp.float32).T)
    w_fused = w_fused.at[:C, Cqp:Cqp + Cq].set(wk.astype(jnp.float32).T)
    w_fused = w_fused.at[:C, 2 * Cqp:2 * Cqp + C].set(wv.astype(jnp.float32).T)
    w_fused = w_fused.astype(jnp.bfloat16)

    # Key bias bk dropped: q_i . bk is constant over keys and cancels exactly
    # in the row softmax.  Query / value biases kept.
    b_fused = jnp.zeros((1, D), jnp.float32)
    b_fused = b_fused.at[0, 0:Cq].set(bq.astype(jnp.float32))
    b_fused = b_fused.at[0, 2 * Cqp:2 * Cqp + C].set(bv.astype(jnp.float32))

    gamma1 = jnp.asarray(gamma, jnp.float32).reshape(1)

    vmem_limit = _vmem_limit_bytes()
    exp_dtype = _default_exp_dtype()

    # ---- Kernel 1: fused QKV projection (all axes parallel). ----
    proj_kernel = functools.partial(_qkv_proj_kernel, cqp=Cqp)
    q_all, kv_all = pl.pallas_call(
        proj_kernel,
        out_shape=(jax.ShapeDtypeStruct((B, N, Cqp), jnp.bfloat16),
                   jax.ShapeDtypeStruct((B, N, Ckv), jnp.bfloat16)),
        grid_spec=pltpu.PrefetchScalarGridSpec(
            num_scalar_prefetch=0,
            grid=(B, n_q),
            in_specs=[
                pl.BlockSpec((None, TQ, Cp), lambda b, i: (b, i, 0)),
                # Grid-invariant weights / bias (constant index => one fetch).
                pl.BlockSpec((Cp, D), lambda b, i: (0, 0)),
                pl.BlockSpec((1, D), lambda b, i: (0, 0)),
            ],
            out_specs=(
                pl.BlockSpec((None, TQ, Cqp), lambda b, i: (b, i, 0)),
                pl.BlockSpec((None, TQ, Ckv), lambda b, i: (b, i, 0)),
            ),
        ),
        compiler_params=pltpu.CompilerParams(
            dimension_semantics=("parallel", "parallel"),
            vmem_limit_bytes=vmem_limit),
    )(x_pad, w_fused, b_fused)

    # ---- Kernel 2: online-softmax attention + residual. ----
    attn_kernel = functools.partial(
        _attn_kernel, tq=TQ, tkv=TKV, n_kv=n_kv, cqp=Cqp, cp=Cp,
        exp_dtype=exp_dtype, approx_recip=approx_recip)
    out_pad = pl.pallas_call(
        attn_kernel,
        out_shape=jax.ShapeDtypeStruct((B, N, Cp), jnp.bfloat16),
        grid_spec=pltpu.PrefetchScalarGridSpec(
            num_scalar_prefetch=0,
            grid=(B, n_q),
            in_specs=[
                pl.BlockSpec((None, TQ, Cqp), lambda b, qi: (b, qi, 0)),
                # Whole-sequence K/V per batch element; constant block index
                # across the query-tile axis -> fetched once per b.
                pl.BlockSpec((None, N, Ckv), lambda b, qi: (b, 0, 0)),
                pl.BlockSpec((None, TQ, Cp), lambda b, qi: (b, qi, 0)),
                pl.BlockSpec(memory_space=pltpu.MemorySpace.SMEM),   # gamma
            ],
            out_specs=pl.BlockSpec((None, TQ, Cp), lambda b, qi: (b, qi, 0)),
        ),
        compiler_params=pltpu.CompilerParams(
            dimension_semantics=("parallel", "parallel"),
            vmem_limit_bytes=vmem_limit),
    )(q_all, kv_all, x_pad, gamma1)

    # Strip channel padding, back to NCHW, f32 to match the module's dtype.
    return jnp.transpose(out_pad[:, :, :C], (0, 2, 1)).reshape(
        B, C, H, W).astype(jnp.float32)


def self_attention_ref(x_nchw, wq, bq, wk, bk, wv, bv, gamma):
    """Pure-JAX f32 reference mirroring the PyTorch forward exactly."""
    B, C, H, W = x_nchw.shape
    N = H * W
    x = x_nchw.reshape(B, C, N)                             # (B, C, N)
    q = jnp.einsum('oc,bcn->bon', wq, x) + bq[None, :, None]
    k = jnp.einsum('oc,bcn->bon', wk, x) + bk[None, :, None]
    v = jnp.einsum('oc,bcn->bon', wv, x) + bv[None, :, None]
    attn = jnp.einsum('bci,bcj->bij', q, k)                 # (B, N, N)
    attn = jax.nn.softmax(attn, axis=-1)
    out = jnp.einsum('bcj,bij->bci', v, attn)               # (B, C, N)
    return (gamma * out + x).reshape(B, C, H, W)


if __name__ == "__main__":
    key = jax.random.PRNGKey(0)
    B, C, H, W = 2, 16, 8, 8          # in_dim=16 -> C//8 = 2
    Cq = C // 8

    ks = jax.random.split(key, 8)
    x = jax.random.normal(ks[0], (B, C, H, W), jnp.float32)
    wq = jax.random.normal(ks[1], (Cq, C), jnp.float32) * 0.1
    bq = jax.random.normal(ks[2], (Cq,), jnp.float32) * 0.1
    wk = jax.random.normal(ks[3], (Cq, C), jnp.float32) * 0.1
    bk = jax.random.normal(ks[4], (Cq,), jnp.float32) * 0.1
    wv = jax.random.normal(ks[5], (C, C), jnp.float32) * 0.1
    bv = jax.random.normal(ks[6], (C,), jnp.float32) * 0.1
    # nn.Parameter(torch.tensor(0.0)) in __init__; use a nonzero deterministic
    # value so the attention path is actually exercised in the check.
    gamma = jnp.float32(0.7)

    y = self_attention_pallas(x, wq, bq, wk, bk, wv, bv, gamma)
    y = jax.block_until_ready(y)

    y_ref = self_attention_ref(x, wq, bq, wk, bk, wv, bv, gamma)
    assert y.shape == (B, C, H, W)
    # bf16 MXU operands / bf16 output (f32 accumulation) vs all-f32 reference:
    # tolerance relaxed accordingly (values are O(1)).
    assert jnp.allclose(y, y_ref, atol=5e-2, rtol=5e-2), "mismatch vs reference"

    print("KERNEL_OK")
</pallas_src>

<mosaic_0001>
module attributes {stable_mosaic.version = 11 : i64} {
  func.func @_qkv_proj_kernel(%arg0: i32, %arg1: i32, %arg2: memref<1x64x128xbf16, #tpu.memory_space<vmem>>, %arg3: memref<128x384xbf16, #tpu.memory_space<vmem>>, %arg4: memref<1x384xf32, #tpu.memory_space<vmem>>, %arg5: memref<1x64x128xbf16, #tpu.memory_space<vmem>>, %arg6: memref<1x64x256xbf16, #tpu.memory_space<vmem>>) attributes {dimension_semantics = [#tpu.dimension_semantics<parallel>, #tpu.dimension_semantics<parallel>], iteration_bounds = array<i64: 2, 1>, scalar_prefetch = 0 : i64, scratch_operands = 0 : i64, tpu.core_type = #tpu.core_type<tc>, window_params = [{transform_indices = @transform_0, window_bounds = array<i64: 1, 64, 128>}, {pipeline_mode = #tpu.pipeline_mode<synchronous>, transform_indices = @transform_1, window_bounds = array<i64: 128, 384>}, {pipeline_mode = #tpu.pipeline_mode<synchronous>, transform_indices = @transform_2, window_bounds = array<i64: 1, 384>}, {transform_indices = @transform_3, window_bounds = array<i64: 1, 64, 128>}, {transform_indices = @transform_4, window_bounds = array<i64: 1, 64, 256>}]} {
    %c0 = arith.constant 0 : index
    %c0_0 = arith.constant 0 : index
    %c0_1 = arith.constant 0 : index
    %0 = vector.load %arg2[%c0, %c0_0, %c0_1] : memref<1x64x128xbf16, #tpu.memory_space<vmem>>, vector<1x64x128xbf16>
    %1 = vector.shape_cast %0 : vector<1x64x128xbf16> to vector<64x128xbf16>
    %c0_2 = arith.constant 0 : index
    %c0_3 = arith.constant 0 : index
    %2 = vector.load %arg3[%c0_2, %c0_3] : memref<128x384xbf16, #tpu.memory_space<vmem>>, vector<128x384xbf16>
    %cst = arith.constant dense<0.000000e+00> : vector<64x384xf32>
    %3 = tpu.matmul %1, %2, %cst {dimension_numbers = #tpu.dot_dimension_numbers<[1], [0], [0], [1], [0, 0, 1, 1], [], []>} : vector<64x128xbf16>, vector<128x384xbf16>, vector<64x384xf32> -> vector<64x384xf32>
    %c0_4 = arith.constant 0 : index
    %c0_5 = arith.constant 0 : index
    %4 = vector.load %arg4[%c0_4, %c0_5] : memref<1x384xf32, #tpu.memory_space<vmem>>, vector<1x384xf32>
    %5 = vector.broadcast %4 : vector<1x384xf32> to vector<64x384xf32>
    %6 = arith.addf %3, %5 : vector<64x384xf32>
    %7 = arith.truncf %6 : vector<64x384xf32> to vector<64x384xbf16>
    %8 = vector.extract_strided_slice %7 {offsets = [0, 0], sizes = [64, 128], strides = [1, 1]} : vector<64x384xbf16> to vector<64x128xbf16>
    %c0_6 = arith.constant 0 : index
    %c0_7 = arith.constant 0 : index
    %c0_8 = arith.constant 0 : index
    %9 = vector.load %arg5[%c0_6, %c0_7, %c0_8] : memref<1x64x128xbf16, #tpu.memory_space<vmem>>, vector<1x64x128xbf16>
    %10 = vector.shape_cast %9 : vector<1x64x128xbf16> to vector<64x128xbf16>
    %11 = vector.shape_cast %8 : vector<64x128xbf16> to vector<1x64x128xbf16>
    tpu.vector_store %arg5[%c0_6, %c0_7, %c0_8], %11 {strides = array<i32>} : memref<1x64x128xbf16, #tpu.memory_space<vmem>>, vector<1x64x128xbf16>,
    %12 = vector.extract_strided_slice %7 {offsets = [0, 128], sizes = [64, 256], strides = [1, 1]} : vector<64x384xbf16> to vector<64x256xbf16>
    %c0_9 = arith.constant 0 : index
    %c0_10 = arith.constant 0 : index
    %c0_11 = arith.constant 0 : index
    %13 = vector.load %arg6[%c0_9, %c0_10, %c0_11] : memref<1x64x256xbf16, #tpu.memory_space<vmem>>, vector<1x64x256xbf16>
    %14 = vector.shape_cast %13 : vector<1x64x256xbf16> to vector<64x256xbf16>
    %15 = vector.shape_cast %12 : vector<64x256xbf16> to vector<1x64x256xbf16>
    tpu.vector_store %arg6[%c0_9, %c0_10, %c0_11], %15 {strides = array<i32>} : memref<1x64x256xbf16, #tpu.memory_space<vmem>>, vector<1x64x256xbf16>,
    return
  }
  func.func @transform_0(%arg0: i32, %arg1: i32) -> (i32, i32, i32) {
    %c0_i32 = arith.constant 0 : i32
    %c0_i32_0 = arith.constant 0 : i32
    return %arg0, %arg1, %c0_i32 : i32, i32, i32
  }
  func.func @transform_1(%arg0: i32, %arg1: i32) -> (i32, i32) {
    %c0_i32 = arith.constant 0 : i32
    %c0_i32_0 = arith.constant 0 : i32
    %c0_i32_1 = arith.constant 0 : i32
    return %c0_i32, %c0_i32_0 : i32, i32
  }
  func.func @transform_2(%arg0: i32, %arg1: i32) -> (i32, i32) {
    %c0_i32 = arith.constant 0 : i32
    %c0_i32_0 = arith.constant 0 : i32
    %c0_i32_1 = arith.constant 0 : i32
    return %c0_i32, %c0_i32_0 : i32, i32
  }
  func.func @transform_3(%arg0: i32, %arg1: i32) -> (i32, i32, i32) {
    %c0_i32 = arith.constant 0 : i32
    %c0_i32_0 = arith.constant 0 : i32
    return %arg0, %arg1, %c0_i32 : i32, i32, i32
  }
  func.func @transform_4(%arg0: i32, %arg1: i32) -> (i32, i32, i32) {
    %c0_i32 = arith.constant 0 : i32
    %c0_i32_0 = arith.constant 0 : i32
    return %arg0, %arg1, %c0_i32 : i32, i32, i32
  }
}

</mosaic_0001>

<bundles_post_ra>
// kernel: tpu_custom_call.1
= control target key start
LH: loop header
LB: loop body
LE: loop exit
PB: predicated region body
PF: predicated region fallthrough
CT: control target
= control target key end

     0   :  { %s1613_s0 = inlined_call_operand.hbm [shape: bf16[2,64,128], index: 0, kind: input, shape index: {}]   ;;  %s1614_s1 = inlined_call_operand.hbm [shape: bf16[128,384], index: 1, kind: input, shape index: {}]   ;;  %s1615_s2 = inlined_call_operand.hbm [shape: f32[1,384], index: 2, kind: input, shape index: {}]   ;;  %s1616_s3 = inlined_call_operand.hbm [shape: bf16[2,64,128], index: 3, kind: output, shape index: {0}]   ;;  %s1617_s4 = inlined_call_operand.hbm [shape: bf16[2,64,256], index: 4, kind: output, shape index: {1}]  }
   0x1   :  { %1618 = sst [smem:[#allocation15_spill]] %s1614_s1 }
   0x2   :  { %1619 = sst [smem:[#allocation16_spill]] %s1615_s2 }
   0x3   :  { %10 = vsyncpa [#allocation3], 0 }
   0x4   :  { %12 = vsyncpa [#allocation3 + $0x1], 0 }
   0x5   :  { %13 = vsyncpa [#allocation6], 0 }
   0x6   :  { %14 = vsyncpa [#allocation4], 0 }
   0x7   :  { %16 = vsyncpa [#allocation4 + $0x1], 0 }
   0x8   :  { %17 = vsyncpa [#allocation10], 0 }
   0x9   :  { %19 = vsyncpa [#allocation10 + $0x1], 0  ;;  %s1374_s15 = smov 0   ;;  %s1376_s16 = smov 0  }
   0xa   :  { %s1378_s17 = smov 0   ;;  %s1380_s18 = smov 0  }
   0xb   :  { %s1382_s19 = smov 0   ;;  %s1384_s20 = smov 0  }
   0xc LB: > { %s836_s21 = sadd.s32 4294967295, %s1337_s20   ;;  %s837_s22 = sadd.s32 4294967294, %s1337_s20   ;;  %s1337_s20 = sphi %s1384_s20, %s25_s20   ;;  %s1333_s19 = sphi %s1382_s19, %s1633_s19   ;;  %s1329_s18 = sphi %s1380_s18, %s1632_s18   ;;  %s1325_s17 = sphi %s1378_s17, %s1631_s17   ;;  %s1321_s16 = sphi %s1376_s16, %s1630_s16   ;;  %s1317_s15 = sphi %s1374_s15, %s1629_s15  }
   0xd   : > { %p59_p0 = scmp.ne.s32.totalorder %s1321_s16, %s1317_s15  ;;  %p1408_p1 = scmp.eq.s32.totalorder %s836_s21, 0 }
   0xe   : > { %p1412_p2 = scmp.eq.s32.totalorder %s836_s21, 1  ;;  %p133_p3 = scmp.eq.s32.totalorder %s837_s22, 1 }
   0xf   : > { %p1418_p4 = por %p1408_p1, %p59_p0  ;;  %p838_p5 = scmp.ge.s32.totalorder %s1337_s20, 1 }
  0x10   : > { %p1423_p6 = por %p133_p3, %p59_p0  ;;  %p168_p7 = scmp.lt.s32.totalorder %s1337_s20, 3 }
  0x11   : > { %s1624_s1 = sld [smem:[#allocation15_spill]]  ;;  %s1339_s5 = smov [#allocation5]  }
  0x12   : > { %p1431_p8 = pnand %p838_p5, %p168_p7  ;;  %s181_s6 = sshll.u32 %s1339_s5, 4  ;;  %s182_s6 = int_to_ptr.vmem [resolvable:$true] %s181_s6 }
  0x13   : > { %p841_p11 = scmp.ge.s32.totalorder %s1337_s20, 2  ;;  %s1626_s2 = sld [smem:[#allocation16_spill]] }
  0x14   : > { %p1047_p9 = pneg %p1431_p8  ;;  %s1340_s10 = smov 192  }
  0x15   : > { %s1341_s11 = smov 12   ;;  %s1342_s12 = smov [#allocation7]  }
  0x16   : > { %p1048_p10 = pnand %p1047_p9, %p1408_p1  ;;  %s196_s13 = sshll.u32 %s1342_s12, 4  ;;  %s197_s13 = int_to_ptr.vmem [resolvable:$true] %s196_s13 }
  0x17   : > { %s179_s29 = sshll.u32 %s1624_s1, 4  ;;  %s37_s14 = sadd.s32 1, %s1333_s19  ;;  %s180_s29 = int_to_ptr.hbm [resolvable:$true] %s179_s29 }
  0x18   : > { %1050 = dma.hbm_to_vmem [thread:$0]  (!%p1048_p10), %s180_s29, 3072, %s182_s6, [#allocation6], %s1340_s10, %s1340_s10, %s1341_s11  }
  0x19   : > { %s194_s9 = sshll.u32 %s1626_s2, 4  ;;  %s46_s21 = sadd.s32 1, %s1325_s17  ;;  %s195_s9 = int_to_ptr.hbm [resolvable:$true] %s194_s9 }
  0x1a   : > { %1053 = dma.hbm_to_vmem [thread:$0]  (!%p1048_p10), %s195_s9, 48, %s197_s13, [#allocation6]  }
  0x1b   : > { %p39_p12 = scmp.ge.s32.totalorder %s37_s14, 2  ;;  %p53_p13 = scmp.ne.s32.totalorder %s1325_s17, %s1321_s16 }
  0x1c   : > { %p54_p0 = scmp.eq.s32.totalorder %s1337_s20, 0  ;;  %p1067_p3 = scmp.lt.s32.totalorder %s1337_s20, 2 }
  0x1d   : > { %s1635_s14 = smov (%p39_p12, %s37_s14), 0  ;;  %p1457_p7 = por %p1412_p2, %p53_p13 }
  0x1e   : > { %p1451_p5 = por %p54_p0, %p53_p13  ;;  %s41_s28 = ssub.s32 %s1333_s19, %s1635_s14 }
  0x1f   : > { %s207_s29 = sand.u32 1, %s1325_s17   ;;  %p44_p9 = scmp.eq.s32.totalorder %s41_s28, 0 }
  0x20   : > { %s842_s5 = sshll.u32 %s207_s29, 5  ;;  %s971_s6 = sshll.u32 %s1333_s19, 5 }
  0x21   : > { %s1466_s7 = scalar_select %p44_p9, %s1325_s17, %s46_s21  }
  0x22   : > { %s218_s10 = scalar_lea.hbm %s1613_s0, %s971_s6  ;;  %s211_s12 = scalar_lea.vmem [#allocation2], %s842_s5 }
  0x23   : > { %s219_s11 = sshll.u32 %s218_s10, 4  ;;  %s221_s13 = sshll.u32 %s211_s12, 4  ;;  %s220_s11 = int_to_ptr.hbm [resolvable:$true] %s219_s11  ;;  %s222_s13 = int_to_ptr.vmem [resolvable:$true] %s221_s13 }
  0x24   : > { %p1055_p2 = pnand %p1067_p3, %p1451_p5  ;;  %s208_s24 = scalar_lea.sflag [#allocation3], %s207_s29 }
  0x25   : > { %s1343_s1 = smov 64   ;;  %s1344_s2 = smov 4  }
  0x26   : > { %1057 = dma.hbm_to_vmem [thread:$0]  (!%p1055_p2), %s220_s11, 512, %s222_s13, %s208_s24, %s1343_s1, %s1343_s1, %s1344_s2  }
  0x27   : > { %233 = sbr.rel (%p1431_p8) target bundleno = 282 (0x11a), region = 32  ;;  %s1478_s21 = sand.u32 (!%p1431_p8), 1, %s1321_s16  }
  0x28   : > { %s846_s28 = sshll.u32 (!%p1431_p8), %s1478_s21, 5  ;;  %s236_s5 = scalar_lea.sflag (!%p1431_p8), [#allocation3], %s1478_s21 }
  0x29   : > { %s1484_s22 = scalar_lea.vmem (!%p1431_p8), [#allocation2], %s846_s28 }
  0x2c   : > { %1300 = dma.done.wait (%p1418_p4), %s236_s5, 512  }
  0x2d   : > { %1302 = vsyncadd (%p1418_p4), %s236_s5, 4294966784 }
  0x2e   : > { %1304 = dma.done.wait (%p1408_p1), [#allocation6], 3120  }
  0x2f   : > { %1306 = vsyncadd (%p1408_p1), [#allocation6], 4294964176  ;;  %v953_v0 = vld [vmem:[#allocation5 + $0xa8] sm:$0xf]  ;;  %v998_v1 = vld [vmem:[#allocation5 + $0xb0] sm:$0xf0] }
  0x30   : > { %v997_v2 = vld [vmem:[#allocation5 + $0xac] sm:$0xf]  ;;  %v954_v3 = vor.u32 %v998_v1, %v953_v0  ;;  %v955_v4 = vld [vmem:[#allocation5 + $0xb4] sm:$0xf0]  ;;  %v961_v5 = vld [vmem:[#allocation5 + $0xb0] sm:$0xf] }
  0x31   : > { %v999_v6 = vld [vmem:[#allocation5 + $0xb8] sm:$0xf0]  ;;  %v958_v7 = vor.u32 %v997_v2, %v955_v4  ;;  %v941_v9 = vld [vmem:[#allocation5 + $0x90] sm:$0xf]  ;;  %v994_v11 = vld [vmem:[#allocation5 + $0x94] sm:$0xf] }
  0x32   : > { %v962_v8 = vor.u32 %v999_v6, %v961_v5  ;;  %v995_v10 = vld [vmem:[#allocation5 + $0x98] sm:$0xf0]  ;;  %483 = vmatpush.bf16.msra.mxu0 %v954_v3  ;;  %v943_v13 = vld [vmem:[#allocation5 + $0x9c] sm:$0xf0]  ;;  %v949_v14 = vld [vmem:[#allocation5 + $0x98] sm:$0xf]  ;;  %1025 = vmatpush.bf16.msra.mxu3 %v954_v3 }
  0x33   : > { %v942_v12 = vor.u32 %v995_v10, %v941_v9  ;;  %v996_v15 = vld [vmem:[#allocation5 + $0xa0] sm:$0xf0]  ;;  %512 = vmatpush.bf16.msra.mxu1 %v958_v7  ;;  %v946_v16 = vor.u32 %v994_v11, %v943_v13  ;;  %v929_v18 = vld [vmem:[#allocation5 + $0x78] sm:$0xf]  ;;  %v991_v20 = vld [vmem:[#allocation5 + $0x7c] sm:$0xf] }
  0x34   : > { %541 = vmatpush.bf16.msra.mxu2 %v962_v8  ;;  %v950_v17 = vor.u32 %v996_v15, %v949_v14  ;;  %v992_v19 = vld [vmem:[#allocation5 + $0x80] sm:$0xf0]  ;;  %v931_v21 = vld [vmem:[#allocation5 + $0x84] sm:$0xf0]  ;;  %v937_v22 = vld [vmem:[#allocation5 + $0x80] sm:$0xf] }
  0x35   : > { %v993_v23 = vld [vmem:[#allocation5 + $0x88] sm:$0xf0]  ;;  %v930_v24 = vor.u32 %v992_v19, %v929_v18  ;;  %v934_v25 = vor.u32 %v991_v20, %v931_v21  ;;  %v917_v27 = vld [vmem:[#allocation5 + $0x60] sm:$0xf]  ;;  %v988_v29 = vld [vmem:[#allocation5 + $0x64] sm:$0xf] }
  0x36   : > { %484 = vmatpush.bf16.msra.mxu0 %v942_v12  ;;  %1026 = vmatpush.bf16.msra.mxu3 %v942_v12  ;;  %v938_v26 = vor.u32 %v993_v23, %v937_v22  ;;  %v989_v28 = vld [vmem:[#allocation5 + $0x68] sm:$0xf0]  ;;  %v919_v30 = vld [vmem:[#allocation5 + $0x6c] sm:$0xf0]  ;;  %v925_v31 = vld [vmem:[#allocation5 + $0x68] sm:$0xf] }
  0x37   : > { %513 = vmatpush.bf16.msra.mxu1 %v946_v16  ;;  %v990_v32 = vld [vmem:[#allocation5 + $0x70] sm:$0xf0]  ;;  %v918_v33 = vor.u32 %v989_v28, %v917_v27  ;;  %v922_v34 = vor.u32 %v988_v29, %v919_v30  ;;  %v905_v36 = vld [vmem:[#allocation5 + $0x48] sm:$0xf]  ;;  %v985_v38 = vld [vmem:[#allocation5 + $0x4c] sm:$0xf] }
  0x38   : > { %542 = vmatpush.bf16.msra.mxu2 %v950_v17  ;;  %v926_v35 = vor.u32 %v990_v32, %v925_v31  ;;  %v986_v37 = vld [vmem:[#allocation5 + $0x50] sm:$0xf0]  ;;  %v907_v39 = vld [vmem:[#allocation5 + $0x54] sm:$0xf0]  ;;  %v913_v40 = vld [vmem:[#allocation5 + $0x50] sm:$0xf] }
  0x39   : > { %v987_v41 = vld [vmem:[#allocation5 + $0x58] sm:$0xf0]  ;;  %v906_v42 = vor.u32 %v986_v37, %v905_v36  ;;  %v910_v43 = vor.u32 %v985_v38, %v907_v39  ;;  %v893_v45 = vld [vmem:[#allocation5 + $0x30] sm:$0xf]  ;;  %v982_v47 = vld [vmem:[#allocation5 + $0x34] sm:$0xf] }
  0x3a   : > { %485 = vmatpush.bf16.msra.mxu0 %v930_v24  ;;  %1027 = vmatpush.bf16.msra.mxu3 %v930_v24  ;;  %v914_v44 = vor.u32 %v987_v41, %v913_v40  ;;  %v983_v46 = vld [vmem:[#allocation5 + $0x38] sm:$0xf0]  ;;  %v895_v48 = vld [vmem:[#allocation5 + $0x3c] sm:$0xf0]  ;;  %v901_v49 = vld [vmem:[#allocation5 + $0x38] sm:$0xf] }
  0x3b   : > { %514 = vmatpush.bf16.msra.mxu1 %v934_v25  ;;  %v984_v50 = vld [vmem:[#allocation5 + $0x40] sm:$0xf0]  ;;  %v894_v51 = vor.u32 %v983_v46, %v893_v45  ;;  %v898_v52 = vor.u32 %v982_v47, %v895_v48  ;;  %v881_v54 = vld [vmem:[#allocation5 + $0x18] sm:$0xf]  ;;  %v979_v56 = vld [vmem:[#allocation5 + $0x1c] sm:$0xf] }
  0x3c   : > { %543 = vmatpush.bf16.msra.mxu2 %v938_v26  ;;  %v902_v53 = vor.u32 %v984_v50, %v901_v49  ;;  %v980_v55 = vld [vmem:[#allocation5 + $0x20] sm:$0xf0]  ;;  %v883_v57 = vld [vmem:[#allocation5 + $0x24] sm:$0xf0]  ;;  %v889_v58 = vld [vmem:[#allocation5 + $0x20] sm:$0xf] }
  0x3d   : > { %v981_v59 = vld [vmem:[#allocation5 + $0x28] sm:$0xf0]  ;;  %v882_v60 = vor.u32 %v980_v55, %v881_v54  ;;  %v886_v61 = vor.u32 %v979_v56, %v883_v57  ;;  %v869_v63 = vld [vmem:[#allocation5] sm:$0xf]  ;;  %v976_v1 = vld [vmem:[#allocation5 + $0x4] sm:$0xf] }
  0x3e   : > { %486 = vmatpush.bf16.msra.mxu0 %v918_v33  ;;  %1028 = vmatpush.bf16.msra.mxu3 %v918_v33  ;;  %v890_v62 = vor.u32 %v981_v59, %v889_v58  ;;  %v977_v0 = vld [vmem:[#allocation5 + $0x8] sm:$0xf0]  ;;  %v871_v2 = vld [vmem:[#allocation5 + $0xc] sm:$0xf0]  ;;  %v877_v3 = vld [vmem:[#allocation5 + $0x8] sm:$0xf] }
  0x3f   : > { %515 = vmatpush.bf16.msra.mxu1 %v922_v34  ;;  %v978_v4 = vld [vmem:[#allocation5 + $0x10] sm:$0xf0]  ;;  %v870_v5 = vor.u32 %v977_v0, %v869_v63  ;;  %v874_v6 = vor.u32 %v976_v1, %v871_v2  ;;  %v972_v8 = vld [vmem:[%s1484_s22] sm:$0xff]  ;;  %v973_v9 = vld [vmem:[%s1484_s22 + $0x8] sm:$0xff]  ;;  %s850_s1 = sshll.u32 %s1478_s21, 6  ;;  %vm626_vm0 = vcmask 1043456  }
  0x40   : > { %544 = vmatpush.bf16.msra.mxu2 %v926_v35  ;;  %v878_v7 = vor.u32 %v978_v4, %v877_v3  ;;  %v974_v10 = vld [vmem:[%s1484_s22 + $0x10] sm:$0xff]  ;;  %v975_v11 = vld [vmem:[%s1484_s22 + $0x18] sm:$0xff]  ;;  %v323_v12 = vld [vmem:[#allocation7] sm:$0x7]  ;;  %s1512_s2 = scalar_lea.vmem [#allocation8], %s846_s28  ;;  %s1517_s23 = scalar_lea.vmem [#allocation9], %s850_s1 }
  0x41   : > { %v1498_v13 = vperm.slane %v323_v12, 0  ;;  %v1500_v14 = vperm.slane %v323_v12, 1  ;;  %v1504_v19 = vperm.slane %v323_v12, 2  ;;  %s1000_s25 = sshll.u32 %s1329_s18, 5  ;;  %s671_s8 = sshll.u32 %s1512_s2, 4  ;;  %s1546_s8 = int_to_ptr.vmem [resolvable:$true] %s671_s8 }
  0x42   : > { %487 = vmatpush.bf16.msra.mxu0 %v906_v42  ;;  %1029 = vmatpush.bf16.msra.mxu3 %v906_v42  ;;  %s670_s6 = scalar_lea.hbm %s1616_s3, %s1000_s25  ;;  %s652_s10 = scalar_lea.sflag [#allocation4], %s1478_s21 }
  0x43   : > { %516 = vmatpush.bf16.msra.mxu1 %v910_v43  ;;  %s673_s9 = sshll.u32 %s670_s6, 4  ;;  %s1239_s28 = scalar_lea.hbm %s1616_s3, 64  ;;  %s674_s9 = int_to_ptr.hbm [resolvable:$true] %s673_s9 }
  0x44   : > { %545 = vmatpush.bf16.msra.mxu2 %v914_v44  ;;  %s1233_s11 = sshra.s32 %s674_s9, 4  ;;  %s1234_s11 = int_to_ptr.hbm [resolvable:$true] %s1233_s11 }
  0x45   : > { %s1235_s12 = scalar_lea.hbm %s1234_s11, 32  ;;  %p1240_p10 = scmp.lt.s32.totalorder %s1234_s11, %s1616_s3 }
  0x46   : > { %488 = vmatpush.bf16.msra.mxu0 %v894_v51  ;;  %1030 = vmatpush.bf16.msra.mxu3 %v894_v51  ;;  %p1236_p1 = scmp.ne.s32.totalorder %s1234_s11, %s1235_s12  ;;  %p1241_p12 = scmp.lt.s32.totalorder %s1239_s28, %s1235_s12 }
  0x47   : > { %517 = vmatpush.bf16.msra.mxu1 %v898_v52 }
  0x48   : > { %546 = vmatpush.bf16.msra.mxu2 %v902_v53  ;;  %p1237_p4 = pnand %p1236_p1, %p1457_p7  ;;  %p1242_p13 = por %p1241_p12, %p1240_p10 }
  0x4a   : > { %489 = vmatpush.bf16.msra.mxu0 %v882_v60  ;;  %1031 = vmatpush.bf16.msra.mxu3 %v882_v60  ;;  %p1238_p8 = pneg %p1237_p4 }
  0x4b   : > { %518 = vmatpush.bf16.msra.mxu1 %v886_v61 }
  0x4c   : > { %547 = vmatpush.bf16.msra.mxu2 %v890_v62  ;;  %p1243_p0 = pnand %p1242_p13, %p1238_p8 }
  0x4e   : > { %490 = vmatpush.bf16.msra.mxu0 %v870_v5  ;;  %1032 = vmatpush.bf16.msra.mxu3 %v870_v5 }
  0x4f   : > { %519 = vmatpush.bf16.msra.mxu1 %v874_v6 }
  0x50   : > { %548 = vmatpush.bf16.msra.mxu2 %v878_v7 }
  0x51   : > { %491 = vmatmul.bf16.vlgmr.msra.gmra.mxu0 %v972_v8  ;;  %496 = vmatmul.bf16.vlgmr.msra.gmra.mxu3 %v973_v9 }
  0x52   : > { %520 = vmatmul.bf16.vlgmr.msra.gmra.mxu1 %v972_v8 }
  0x53   : > { %549 = vmatmul.bf16.vlgmr.msra.gmra.mxu2 %v972_v8 }
  0x61   : > { %501 = vmatmul.bf16.gmra.mxu3 %v974_v10 }
  0x62   : > { %525 = vmatmul.bf16.gmra.mxu1 %v973_v9 }
  0x63   : > { %554 = vmatmul.bf16.gmra.mxu2 %v973_v9 }
  0x71   : > { %506 = vmatmul.bf16.gmra.mxu3 %v975_v11 }
  0x72   : > { %530 = vmatmul.bf16.gmra.mxu1 %v974_v10 }
  0x73   : > { %559 = vmatmul.bf16.gmra.mxu2 %v974_v10 }
  0x82   : > { %535 = vmatmul.bf16.gmra.mxu1 %v975_v11 }
  0x83   : > { %564 = vmatmul.bf16.gmra.mxu2 %v975_v11 }
  0xce   : > { %v492_v15 = vpop.f32.mrf.mxu0 }
  0xcf   : > { %v521_v16 = vpop.f32.mrf.mxu1  ;;  %v493_v17 = vadd.f32 %v492_v15, %v1498_v13 }
  0xd0   : > { %v522_v18 = vadd.f32 %v521_v16, %v1500_v14 }
  0xd2   : > { %v570_v20 = vpack.c.bf16 %v522_v18, %v493_v17 }
  0xd4   : > { %v497_v21 = vpop.f32.mrf.mxu3  ;;  %v610_v27 = vrot.slane %v570_v20, 4 }
  0xd5   : > { %v498_v32 = vadd.f32 %v497_v21, %v1498_v13 }
  0xd6   : > { %v550_v22 = vpop.f32.mrf.mxu2  ;;  %v494_v24 = vpop.f32.mrf.mxu0 }
  0xd7   : > { %v551_v23 = vadd.f32 %v550_v22, %v1504_v19  ;;  %v495_v25 = vadd.f32 %v494_v24, %v1498_v13  ;;  %v523_v26 = vpop.f32.mrf.mxu1 }
  0xd8   : > { %v524_v31 = vadd.f32 %v523_v26, %v1500_v14 }
  0xd9   : > { %v571_v28 = vpack.c.bf16 %v551_v23, %v551_v23  ;;  %v1005_v29 = vpack.c.bf16 %v495_v25, %v493_v17 }
  0xda   : > { %v572_v37 = vpack.c.bf16 %v524_v31, %v495_v25 }
  0xdb   : > { %v611_v30 = vrot.slane %v571_v28, 4  ;;  %1006 = vst [vmem:[%s1512_s2] sm:$0xff] %v1005_v29  }
  0xdc   : > { %v499_v34 = vpop.f32.mrf.mxu3  ;;  %v612_v43 = vrot.slane %v572_v37, 4 }
  0xdd   : > { %v627_v33 = vsel %vm626_vm0, %v610_v27, %v611_v30  ;;  %v500_v36 = vadd.f32 %v499_v34, %v1498_v13 }
  0xde   : > { %643 = vst [vmem:[%s1517_s23] sm:$0xff] %v627_v33  ;;  %v552_v35 = vpop.f32.mrf.mxu2 }
  0xdf   : > { %v553_v38 = vadd.f32 %v552_v35, %v1504_v19  ;;  %v526_v39 = vpop.f32.mrf.mxu1  ;;  %v1010_v40 = vpack.c.bf16 %v500_v36, %v498_v32 }
  0xe0   : > { %v527_v42 = vadd.f32 %v526_v39, %v1500_v14 }
  0xe1   : > { %v573_v41 = vpack.c.bf16 %v553_v38, %v553_v38  ;;  %1022 = vst [vmem:[%s1512_s2 + $0x8] sm:$0xff] %v1010_v40  }
  0xe2   : > { %v574_v46 = vpack.c.bf16 %v527_v42, %v498_v32 }
  0xe3   : > { %v613_v44 = vrot.slane %v573_v41, 4 }
  0xe4   : > { %v502_v47 = vpop.f32.mrf.mxu3  ;;  %v614_v51 = vrot.slane %v574_v46, 4 }
  0xe5   : > { %v628_v45 = vsel %vm626_vm0, %v612_v43, %v613_v44  ;;  %v503_v55 = vadd.f32 %v502_v47, %v1498_v13 }
  0xe6   : > { %644 = vst [vmem:[%s1517_s23 + $0x8] sm:$0xff] %v628_v45  ;;  %v555_v48 = vpop.f32.mrf.mxu2 }
  0xe7   : > { %v556_v49 = vadd.f32 %v555_v48, %v1504_v19  ;;  %v528_v50 = vpop.f32.mrf.mxu1 }
  0xe8   : > { %v529_v54 = vadd.f32 %v528_v50, %v1500_v14 }
  0xe9   : > { %v575_v52 = vpack.c.bf16 %v556_v49, %v556_v49 }
  0xea   : > { %v576_v60 = vpack.c.bf16 %v529_v54, %v500_v36 }
  0xeb   : > { %v615_v53 = vrot.slane %v575_v52, 4 }
  0xec   : > { %v504_v57 = vpop.f32.mrf.mxu3  ;;  %v616_v2 = vrot.slane %v576_v60, 4 }
  0xed   : > { %v629_v56 = vsel %vm626_vm0, %v614_v51, %v615_v53  ;;  %v505_v59 = vadd.f32 %v504_v57, %v1498_v13 }
  0xee   : > { %645 = vst [vmem:[%s1517_s23 + $0x10] sm:$0xff] %v629_v56  ;;  %v557_v58 = vpop.f32.mrf.mxu2 }
  0xef   : > { %v558_v61 = vadd.f32 %v557_v58, %v1504_v19  ;;  %v531_v62 = vpop.f32.mrf.mxu1  ;;  %v1015_v63 = vpack.c.bf16 %v505_v59, %v503_v55 }
  0xf0   : > { %v532_v1 = vadd.f32 %v531_v62, %v1500_v14 }
  0xf1   : > { %v577_v0 = vpack.c.bf16 %v558_v61, %v558_v61  ;;  %1023 = vst [vmem:[%s1512_s2 + $0x10] sm:$0xff] %v1015_v63  }
  0xf2   : > { %v578_v5 = vpack.c.bf16 %v532_v1, %v503_v55 }
  0xf3   : > { %v617_v3 = vrot.slane %v577_v0, 4 }
  0xf4   : > { %v507_v6 = vpop.f32.mrf.mxu3  ;;  %v618_v10 = vrot.slane %v578_v5, 4 }
  0xf5   : > { %v630_v4 = vsel %vm626_vm0, %v616_v2, %v617_v3  ;;  %v508_v16 = vadd.f32 %v507_v6, %v1498_v13 }
  0xf6   : > { %646 = vst [vmem:[%s1517_s23 + $0x18] sm:$0xff] %v630_v4  ;;  %v560_v7 = vpop.f32.mrf.mxu2 }
  0xf7   : > { %v561_v8 = vadd.f32 %v560_v7, %v1504_v19  ;;  %v533_v9 = vpop.f32.mrf.mxu1 }
  0xf8   : > { %v534_v15 = vadd.f32 %v533_v9, %v1500_v14 }
  0xf9   : > { %v579_v11 = vpack.c.bf16 %v561_v8, %v561_v8 }
  0xfa   : > { %v580_v22 = vpack.c.bf16 %v534_v15, %v505_v59 }
  0xfb   : > { %v619_v12 = vrot.slane %v579_v11, 4 }
  0xfc   : > { %v509_v18 = vpop.f32.mrf.mxu3  ;;  %v620_v28 = vrot.slane %v580_v22, 4 }
  0xfd   : > { %v631_v17 = vsel %vm626_vm0, %v618_v10, %v619_v12  ;;  %v510_v21 = vadd.f32 %v509_v18, %v1498_v13 }
  0xfe   : > { %647 = vst [vmem:[%s1517_s23 + $0x20] sm:$0xff] %v631_v17  ;;  %v562_v20 = vpop.f32.mrf.mxu2 }
  0xff   : > { %v563_v23 = vadd.f32 %v562_v20, %v1504_v19  ;;  %v536_v24 = vpop.f32.mrf.mxu1  ;;  %v1020_v25 = vpack.c.bf16 %v510_v21, %v508_v16 }
 0x100   : > { %v537_v27 = vadd.f32 %v536_v24, %v1500_v14 }
 0x101   : > { %v581_v26 = vpack.c.bf16 %v563_v23, %v563_v23  ;;  %1024 = vst [vmem:[%s1512_s2 + $0x18] sm:$0xff] %v1020_v25  }
 0x103   : > { %v621_v29 = vrot.slane %v581_v26, 4 }
 0x104   : > { %1246 = shalt.err (!%p1243_p0)
}
 0x105   : > { %s1345_s1 = smov 64   ;;  %s1346_s2 = smov 4   ;;  %v632_v13 = vsel %vm626_vm0, %v620_v28, %v621_v29  ;;  %v582_v30 = vpack.c.bf16 %v537_v27, %v508_v16 }
 0x106   : > { %1043 = dma.vmem_to_hbm [thread:$0]  (%p1457_p7), %s1546_s8, 512, %s674_s9, %s652_s10, %s1345_s1, %s1345_s1, %s1346_s2   ;;  %v565_v31 = vpop.f32.mrf.mxu2 }
 0x107   : > { %648 = vst [vmem:[%s1517_s23 + $0x28] sm:$0xff] %v632_v13  ;;  %v566_v32 = vadd.f32 %v565_v31, %v1504_v19  ;;  %v538_v33 = vpop.f32.mrf.mxu1  ;;  %v622_v34 = vrot.slane %v582_v30, 4  ;;  %s1001_s25 = sshll.u32 %s1329_s18, 6  ;;  %s691_s8 = sshll.u32 %s1517_s23, 4  ;;  %s692_s8 = int_to_ptr.vmem [resolvable:$true] %s691_s8 }
 0x108   : > { %v539_v37 = vadd.f32 %v538_v33, %v1500_v14  ;;  %s690_s6 = scalar_lea.hbm %s1617_s4, %s1001_s25  ;;  %s657_s18 = scalar_lea.sflag [#allocation10], %s1478_s21 }
 0x109   : > { %v583_v35 = vpack.c.bf16 %v566_v32, %v566_v32  ;;  %s693_s9 = sshll.u32 %s690_s6, 4  ;;  %s1267_s24 = scalar_lea.hbm %s1617_s4, 128  ;;  %s694_s9 = int_to_ptr.hbm [resolvable:$true] %s693_s9 }
 0x10a   : > { %v584_v40 = vpack.c.bf16 %v539_v37, %v510_v21  ;;  %s1261_s10 = sshra.s32 %s694_s9, 4  ;;  %s1262_s10 = int_to_ptr.hbm [resolvable:$true] %s1261_s10 }
 0x10b   : > { %v623_v36 = vrot.slane %v583_v35, 4  ;;  %s1263_s11 = scalar_lea.hbm %s1262_s10, 64  ;;  %p1268_p2 = scmp.lt.s32.totalorder %s1262_s10, %s1617_s4 }
 0x10c   : > { %v624_v43 = vrot.slane %v584_v40, 4  ;;  %p1264_p3 = scmp.ne.s32.totalorder %s1262_s10, %s1263_s11  ;;  %p1269_p1 = scmp.lt.s32.totalorder %s1267_s24, %s1263_s11 }
 0x10d   : > { %v633_v38 = vsel %vm626_vm0, %v622_v34, %v623_v36 }
 0x10e   : > { %649 = vst [vmem:[%s1517_s23 + $0x30] sm:$0xff] %v633_v38  ;;  %v567_v39 = vpop.f32.mrf.mxu2  ;;  %p1265_p5 = pnand %p1264_p3, %p1457_p7  ;;  %p1270_p4 = por %p1269_p1, %p1268_p2 }
 0x10f   : > { %v568_v41 = vadd.f32 %v567_v39, %v1504_v19 }
 0x110   : > { %p1266_p9 = pneg %p1265_p5 }
 0x111   : > { %v585_v42 = vpack.c.bf16 %v568_v41, %v568_v41 }
 0x112   : > { %p1271_p8 = pnand %p1270_p4, %p1266_p9 }
 0x113   : > { %v625_v14 = vrot.slane %v585_v42, 4 }
 0x115   : > { %v634_v44 = vsel %vm626_vm0, %v624_v43, %v625_v14 }
 0x116   : > { %650 = vst [vmem:[%s1517_s23 + $0x38] sm:$0xff] %v634_v44 }
 0x117   : > { %1274 = shalt.err (!%p1271_p8)
}
 0x118   : > { %s1347_s21 = smov 128   ;;  %s1348_s23 = smov 8  }
 0x119   : > { %1044 = dma.vmem_to_hbm [thread:$0]  (%p1457_p7), %s692_s8, 1024, %s694_s9, %s657_s18, %s1347_s21, %s1347_s21, %s1348_s23  }
 0x11a PF: > { %s708_s22 = sand.u32 1, %s1317_s15   ;;  %p1059_p10 = pnand %p841_p11, %p1423_p6 }
 0x11b   : > { %s709_s1 = scalar_lea.sflag [#allocation4], %s708_s22 }
 0x11c   : > { %p1060_p12 = pneg %p1059_p10 }
 0x11e   : > { %1308 = dma.done.wait (%p1060_p12), %s709_s1, 512  }
 0x11f   : > { %1310 = vsyncadd (%p1060_p12), %s709_s1, 4294966784  ;;  %s719_s2 = scalar_lea.sflag [#allocation10], %s708_s22 }
 0x120   : > { %1312 = dma.done.wait (%p1060_p12), %s719_s2, 1024  }
 0x121   : > { %1314 = vsyncadd (%p1060_p12), %s719_s2, 4294966272  ;;  %s25_s20 = sadd.s32 1, %s1337_s20   ;;  %s1629_s15 = smov %s1321_s16 }
 0x122   : > { %p22_p13 = scmp.ge.s32.totalorder %s25_s20, 4   ;;  %s1630_s16 = smov %s1325_s17 }
 0x123   : > { %s1631_s17 = smov %s1466_s7  ;;  %s1632_s18 = smov %s1333_s19 }
 0x124   : > { %s1633_s19 = smov %s1635_s14  ;;  %24 = sbr.rel (!%p22_p13) target bundleno = 12 (0xc), region = 102 }
 0x129   :  { %725 = vsyncpa [#allocation3], 1 }
 0x12a   :  { %727 = vsyncpa [#allocation3 + $0x1], 1 }
 0x12b   :  { %728 = vsyncpa [#allocation6], 1 }
 0x12c   :  { %729 = vsyncpa [#allocation4], 1 }
 0x12d   :  { %731 = vsyncpa [#allocation4 + $0x1], 1 }
 0x12e   :  { %732 = vsyncpa [#allocation10], 1 }
 0x12f   :  { %734 = vsyncpa [#allocation10 + $0x1], 1 }

</bundles_post_ra>
